<compile_context>
chip_gen: v7x
topology: tpu7x:2x2x1
jax: 0.10.0
libtpu: 0.0.40
codegen_flags: <defaults>
</compile_context>

<pallas_src>
import jax
import jax.numpy as jnp
from jax.experimental import pallas as pl
from jax.experimental.pallas import tpu as pltpu


def _round_up(x, m):
    return ((x + m - 1) // m) * m


# ---------------------------------------------------------------------------
# One-time parameter preparation (hoisted out of the per-step path).
# ---------------------------------------------------------------------------
def prepare_gru_params(params, dtype=jnp.float32, lane_align=128):
    """Re-layout GRUCell params once.

    Returns:
      wa: (A, 4*Ep) per-action table; row `a` holds the four lane-aligned gate
          blocks [i_r+b_ir+b_hr | i_z+b_iz+b_hz | i_n+b_in | b_hn].
      wh: (E, 4*Ep) hidden weights [W_hr^T | W_hz^T | 0 | W_hn^T].
    Gate blocks are padded to Ep = round_up(E, lane_align) lanes so in-kernel
    gate slices start on vreg boundaries.

    `dtype=jnp.bfloat16` halves weight bytes / VMEM footprint on v6e/v7x
    (matmuls still accumulate in f32); note the folded biases then round to
    bf16 as well, so keep the default f32 for exact PyTorch parity.
    """
    w_ih, w_hh = params["w_ih"], params["w_hh"]
    b_ih, b_hh = params["b_ih"], params["b_hh"]
    three_e, action_dim = w_ih.shape
    emb = three_e // 3
    ep = _round_up(emb, lane_align)

    w_ir, w_iz, w_in = w_ih[:emb], w_ih[emb:2 * emb], w_ih[2 * emb:]
    w_hr, w_hz, w_hn = w_hh[:emb], w_hh[emb:2 * emb], w_hh[2 * emb:]
    b_ir, b_iz, b_in = b_ih[:emb], b_ih[emb:2 * emb], b_ih[2 * emb:]
    b_hr, b_hz, b_hn = b_hh[:emb], b_hh[emb:2 * emb], b_hh[2 * emb:]

    wa = jnp.zeros((action_dim, 4 * ep), jnp.float32)
    wa = wa.at[:, 0 * ep:0 * ep + emb].set(w_ir.T + (b_ir + b_hr)[None, :])
    wa = wa.at[:, 1 * ep:1 * ep + emb].set(w_iz.T + (b_iz + b_hz)[None, :])
    wa = wa.at[:, 2 * ep:2 * ep + emb].set(w_in.T + b_in[None, :])
    wa = wa.at[:, 3 * ep:3 * ep + emb].set(
        jnp.broadcast_to(b_hn[None, :], (action_dim, emb)))

    wh = jnp.zeros((emb, 4 * ep), jnp.float32)
    wh = wh.at[:, 0 * ep:0 * ep + emb].set(w_hr.T)
    wh = wh.at[:, 1 * ep:1 * ep + emb].set(w_hz.T)
    wh = wh.at[:, 3 * ep:3 * ep + emb].set(w_hn.T)

    return {"wa": wa.astype(dtype), "wh": wh.astype(dtype),
            "emb_dim": emb, "ep": ep, "action_dim": action_dim}


# ---------------------------------------------------------------------------
# Shared in-kernel GRU step (two fused MXU pushes, lane-aligned gate slices).
# ---------------------------------------------------------------------------
def _gru_cell(a_col, h, wa, wh, emb, ep):
    """a_col: (B,1) int32 actions; h: (B,E) f32; wa/wh from prepare_gru_params."""
    batch = h.shape[0]
    action_dim = wa.shape[0]
    lanes = jax.lax.broadcasted_iota(jnp.int32, (batch, action_dim), 1)
    one_hot = (lanes == a_col).astype(wa.dtype)            # single VPU compare
    # Two tiny MXU pushes; all biases already folded into wa.
    g = (jnp.dot(one_hot, wa, preferred_element_type=jnp.float32)
         + jnp.dot(h.astype(wh.dtype), wh, preferred_element_type=jnp.float32))
    # Gate slices start at 128-lane (vreg) boundaries.  Elementwise math in f32
    # (required on v5e: no bf16 VPU/EUP).
    r = jax.nn.sigmoid(g[:, 0 * ep:0 * ep + emb])
    z = jax.nn.sigmoid(g[:, 1 * ep:1 * ep + emb])
    n = jnp.tanh(g[:, 2 * ep:2 * ep + emb] + r * g[:, 3 * ep:3 * ep + emb])
    return (1.0 - z) * n + z * h


# ---------------------------------------------------------------------------
# Single-step kernel (exactly OpenLoop.forward).
# ---------------------------------------------------------------------------
def _open_loop_step_kernel(act_ref, h_ref, wa_ref, wh_ref, out_ref):
    emb = h_ref.shape[1]
    ep = wh_ref.shape[1] // 4
    h = h_ref[...].astype(jnp.float32)
    h_new = _gru_cell(act_ref[...], h, wa_ref[...], wh_ref[...], emb, ep)
    out_ref[...] = h_new.astype(out_ref.dtype)


def open_loop_forward(action, hidden_state, prep):
    """action: int (B,); hidden_state: f32 (B, E); prep from prepare_gru_params."""
    batch = action.shape[0]
    emb = prep["emb_dim"]
    # Clamp to keep the one-hot compare meaningful (PyTorch F.one_hot would
    # raise on out-of-range actions; here they are silently clipped).
    act = jnp.clip(action.astype(jnp.int32), 0, prep["action_dim"] - 1)
    act = act.reshape(batch, 1)

    vmem = pl.BlockSpec(memory_space=pltpu.MemorySpace.VMEM)
    return pl.pallas_call(
        _open_loop_step_kernel,
        out_shape=jax.ShapeDtypeStruct((batch, emb), hidden_state.dtype),
        in_specs=[vmem, vmem, vmem, vmem],
        out_specs=vmem,
    )(act, hidden_state, prep["wa"], prep["wh"])


# ---------------------------------------------------------------------------
# Fused T-step rollout: ONE kernel invocation, in-kernel time loop.
# ---------------------------------------------------------------------------
def _open_loop_rollout_kernel(act_ref, h0_ref, wa_ref, wh_ref, out_ref):
    steps = act_ref.shape[0]
    emb = h0_ref.shape[1]
    ep = wh_ref.shape[1] // 4
    # Hoist weight loads out of the time loop (they stay resident in vregs/VMEM).
    wa = wa_ref[...]
    wh = wh_ref[...]

    def step(t, h):
        h_new = _gru_cell(act_ref[t], h, wa, wh, emb, ep)
        out_ref[t] = h_new.astype(out_ref.dtype)   # VMEM store; HBM DMA once at end
        return h_new

    jax.lax.fori_loop(0, steps, step, h0_ref[...].astype(jnp.float32),
                      unroll=True)


def open_loop_rollout(actions, hidden_state, prep, *, batch_blocks=1):
    """actions: int (T, B); hidden_state: f32 (B, E).  Returns (T, B, E) hiddens.

    `batch_blocks` optionally splits the batch over a leading "parallel" grid
    axis (useful on v7x's 2 TensorCores when B/batch_blocks stays a multiple of
    8); the time axis is a sequential recurrence and runs in-kernel.
    """
    steps, batch = actions.shape
    emb = prep["emb_dim"]
    assert batch % batch_blocks == 0
    bp = batch // batch_blocks
    acts = jnp.clip(actions.astype(jnp.int32), 0, prep["action_dim"] - 1)
    acts = acts.reshape(steps, batch, 1)
    a_rows, w_cols = prep["wa"].shape
    e_rows = prep["wh"].shape[0]

    return pl.pallas_call(
        _open_loop_rollout_kernel,
        out_shape=jax.ShapeDtypeStruct((steps, batch, emb), hidden_state.dtype),
        grid=(batch_blocks,),
        in_specs=[
            pl.BlockSpec((steps, bp, 1), lambda c: (0, c, 0)),   # actions
            pl.BlockSpec((bp, emb), lambda c: (c, 0)),           # h0
            pl.BlockSpec((a_rows, w_cols), lambda c: (0, 0)),    # Wa (resident)
            pl.BlockSpec((e_rows, w_cols), lambda c: (0, 0)),    # Wh (resident)
        ],
        out_specs=pl.BlockSpec((steps, bp, emb), lambda c: (0, c, 0)),
        compiler_params=pltpu.CompilerParams(
            dimension_semantics=("parallel",)),
    )(acts, hidden_state, prep["wa"], prep["wh"])


# ---------------------------------------------------------------------------
# Init + pure-JAX reference (PyTorch GRUCell semantics).
# ---------------------------------------------------------------------------
def init_gru_params(key, emb_dim, action_dim):
    """nn.GRUCell-shaped params, U(-1/sqrt(E), 1/sqrt(E))."""
    k1, k2, k3, k4 = jax.random.split(key, 4)
    bound = 1.0 / jnp.sqrt(jnp.float32(emb_dim))
    return {
        "w_ih": jax.random.uniform(k1, (3 * emb_dim, action_dim), jnp.float32, -bound, bound),
        "w_hh": jax.random.uniform(k2, (3 * emb_dim, emb_dim), jnp.float32, -bound, bound),
        "b_ih": jax.random.uniform(k3, (3 * emb_dim,), jnp.float32, -bound, bound),
        "b_hh": jax.random.uniform(k4, (3 * emb_dim,), jnp.float32, -bound, bound),
    }


def _reference_gru(action, h, params, action_dim):
    x = jax.nn.one_hot(action, action_dim, dtype=jnp.float32)
    emb = h.shape[1]
    gi = x @ params["w_ih"].T + params["b_ih"]
    gh = h @ params["w_hh"].T + params["b_hh"]
    i_r, i_z, i_n = gi[:, :emb], gi[:, emb:2 * emb], gi[:, 2 * emb:]
    h_r, h_z, h_n = gh[:, :emb], gh[:, emb:2 * emb], gh[:, 2 * emb:]
    r = jax.nn.sigmoid(i_r + h_r)
    z = jax.nn.sigmoid(i_z + h_z)
    n = jnp.tanh(i_n + r * h_n)
    return (1.0 - z) * n + z * h


if __name__ == "__main__":
    batch = 8
    emb_dim = 32       # GRU hidden size == emb_dim
    action_dim = 8
    num_units = 64     # unused by OpenLoop.forward (matches the PyTorch module)
    steps = 8          # rollout length for the fused-T kernel

    key = jax.random.PRNGKey(0)
    k_param, k_act, k_h, k_seq = jax.random.split(key, 4)

    params = init_gru_params(k_param, emb_dim, action_dim)
    prep = prepare_gru_params(params)      # one-time weight re-layout (f32: exact parity)

    action = jax.random.randint(k_act, (batch,), 0, action_dim, dtype=jnp.int32)
    hidden = jax.random.normal(k_h, (batch, emb_dim), dtype=jnp.float32)
    actions_seq = jax.random.randint(k_seq, (steps, batch), 0, action_dim, dtype=jnp.int32)

    # Pure-JAX references.
    ref_step = _reference_gru(action, hidden, params, action_dim)

    def _scan_ref(h0, acts):
        def body(h, a):
            hn = _reference_gru(a, h, params, action_dim)
            return hn, hn
        _, hs = jax.lax.scan(body, h0, acts)
        return hs

    ref_roll = _scan_ref(hidden, actions_seq)

    # Single-step kernel (exact OpenLoop.forward).
    out_step = jax.block_until_ready(open_loop_forward(action, hidden, prep))
    assert out_step.shape == (batch, emb_dim)
    assert jnp.allclose(out_step, ref_step, rtol=1e-4, atol=1e-4)

    # Fused T-step rollout kernel (single invocation, in-kernel time loop).
    out_roll = jax.block_until_ready(open_loop_rollout(actions_seq, hidden, prep))
    assert out_roll.shape == (steps, batch, emb_dim)
    assert jnp.allclose(out_roll, ref_roll, rtol=1e-4, atol=1e-4)

    print("KERNEL_OK")
</pallas_src>

<mosaic_0001>
module attributes {stable_mosaic.version = 11 : i64} {
  func.func @_open_loop_step_kernel(%arg0: memref<8x1xi32, #tpu.memory_space<vmem>>, %arg1: memref<8x32xf32, #tpu.memory_space<vmem>>, %arg2: memref<8x512xf32, #tpu.memory_space<vmem>>, %arg3: memref<32x512xf32, #tpu.memory_space<vmem>>, %arg4: memref<8x32xf32, #tpu.memory_space<vmem>>) attributes {dimension_semantics = [], scalar_prefetch = 0 : i64, scratch_operands = 0 : i64, tpu.core_type = #tpu.core_type<tc>} {
    %c0 = arith.constant 0 : index
    %c0_0 = arith.constant 0 : index
    %0 = vector.load %arg1[%c0, %c0_0] : memref<8x32xf32, #tpu.memory_space<vmem>>, vector<8x32xf32>
    %c0_1 = arith.constant 0 : index
    %c0_2 = arith.constant 0 : index
    %1 = vector.load %arg0[%c0_1, %c0_2] : memref<8x1xi32, #tpu.memory_space<vmem>>, vector<8x1xi32>
    %c0_3 = arith.constant 0 : index
    %c0_4 = arith.constant 0 : index
    %2 = vector.load %arg2[%c0_3, %c0_4] : memref<8x512xf32, #tpu.memory_space<vmem>>, vector<8x512xf32>
    %c0_5 = arith.constant 0 : index
    %c0_6 = arith.constant 0 : index
    %3 = vector.load %arg3[%c0_5, %c0_6] : memref<32x512xf32, #tpu.memory_space<vmem>>, vector<32x512xf32>
    %4 = tpu.iota {dimensions = array<i32: 1>} : vector<8x8xi32>
    %5 = vector.broadcast %1 : vector<8x1xi32> to vector<8x8xi32>
    %6 = arith.cmpi eq, %4, %5 : vector<8x8xi32>
    %7 = arith.extui %6 : vector<8x8xi1> to vector<8x8xi32>
    %8 = arith.sitofp %7 : vector<8x8xi32> to vector<8x8xf32>
    %cst = arith.constant dense<0.000000e+00> : vector<8x512xf32>
    %9 = tpu.matmul %8, %2, %cst {dimension_numbers = #tpu.dot_dimension_numbers<[1], [0], [0], [1], [0, 0, 1, 1], [], []>} : vector<8x8xf32>, vector<8x512xf32>, vector<8x512xf32> -> vector<8x512xf32>
    %cst_7 = arith.constant dense<0.000000e+00> : vector<8x512xf32>
    %10 = tpu.matmul %0, %3, %cst_7 {dimension_numbers = #tpu.dot_dimension_numbers<[1], [0], [0], [1], [0, 0, 1, 1], [], []>} : vector<8x32xf32>, vector<32x512xf32>, vector<8x512xf32> -> vector<8x512xf32>
    %11 = arith.addf %9, %10 : vector<8x512xf32>
    %12 = vector.extract_strided_slice %11 {offsets = [0, 0], sizes = [8, 32], strides = [1, 1]} : vector<8x512xf32> to vector<8x32xf32>
    %13 = arith.negf %12 : vector<8x32xf32>
    %14 = math.exp %13 : vector<8x32xf32>
    %cst_8 = arith.constant 1.000000e+00 : f32
    %15 = vector.broadcast %cst_8 : f32 to vector<8x32xf32>
    %16 = arith.addf %15, %14 : vector<8x32xf32>
    %17 = arith.divf %15, %16 : vector<8x32xf32>
    %18 = vector.extract_strided_slice %11 {offsets = [0, 128], sizes = [8, 32], strides = [1, 1]} : vector<8x512xf32> to vector<8x32xf32>
    %19 = arith.negf %18 : vector<8x32xf32>
    %20 = math.exp %19 : vector<8x32xf32>
    %cst_9 = arith.constant 1.000000e+00 : f32
    %21 = vector.broadcast %cst_9 : f32 to vector<8x32xf32>
    %22 = arith.addf %21, %20 : vector<8x32xf32>
    %23 = arith.divf %21, %22 : vector<8x32xf32>
    %24 = vector.extract_strided_slice %11 {offsets = [0, 256], sizes = [8, 32], strides = [1, 1]} : vector<8x512xf32> to vector<8x32xf32>
    %25 = vector.extract_strided_slice %11 {offsets = [0, 384], sizes = [8, 32], strides = [1, 1]} : vector<8x512xf32> to vector<8x32xf32>
    %26 = arith.mulf %17, %25 : vector<8x32xf32>
    %27 = arith.addf %24, %26 : vector<8x32xf32>
    %28 = math.tanh %27 : vector<8x32xf32>
    %cst_10 = arith.constant 1.000000e+00 : f32
    %29 = vector.broadcast %cst_10 : f32 to vector<8x32xf32>
    %30 = arith.subf %29, %23 : vector<8x32xf32>
    %31 = arith.mulf %30, %28 : vector<8x32xf32>
    %32 = arith.mulf %23, %0 : vector<8x32xf32>
    %33 = arith.addf %31, %32 : vector<8x32xf32>
    %c0_11 = arith.constant 0 : index
    %c0_12 = arith.constant 0 : index
    %34 = vector.load %arg4[%c0_11, %c0_12] : memref<8x32xf32, #tpu.memory_space<vmem>>, vector<8x32xf32>
    tpu.vector_store %arg4[%c0_11, %c0_12], %33 {strides = array<i32>} : memref<8x32xf32, #tpu.memory_space<vmem>>, vector<8x32xf32>,
    return
  }
}

</mosaic_0001>

<bundles_post_ra>
// kernel: tpu_custom_call.1
= control target key start
LH: loop header
LB: loop body
LE: loop exit
PB: predicated region body
PF: predicated region fallthrough
CT: control target
= control target key end

     0   :  { %9 = vsyncpa [#allocation3], 0  ;;  %s603_s0 = inlined_call_operand.vmem [shape: s32[8,1], index: 0, kind: input, shape index: {}]   ;;  %s604_s1 = inlined_call_operand.vmem [shape: f32[8,32], index: 1, kind: input, shape index: {}]   ;;  %s605_s2 = inlined_call_operand.hbm [shape: f32[8,512], index: 2, kind: input, shape index: {}]   ;;  %s606_s3 = inlined_call_operand.hbm [shape: f32[32,512], index: 3, kind: input, shape index: {}]   ;;  %s607_s4 = inlined_call_operand.hbm [shape: f32[8,32], index: 4, kind: output, shape index: {}]  }
   0x1   :  { %10 = vsyncpa [#allocation6], 0 }
   0x2   :  { %11 = vsyncpa [#allocation4], 0  ;;  %s519_s15 = smov [#allocation2]   ;;  %s520_s17 = smov [#allocation5]  }
   0x3   :  { %s22_s16 = sshll.u32 %s519_s15, 4  ;;  %s31_s18 = sshll.u32 %s520_s17, 4  ;;  %s23_s16 = int_to_ptr.vmem [resolvable:$true] %s22_s16  ;;  %s551_s18 = int_to_ptr.vmem [resolvable:$true] %s31_s18 }
   0x4   :  { %s447_s21 = scalar_lea.hbm %s605_s2, 512 }
   0x5   :  { %p448_p0 = scmp.ne.s32.totalorder %s605_s2, %s447_s21  ;;  %p451_p1 = scmp.lt.u32.totalorder %s447_s21, %s605_s2 }
   0x7   :  { %p453_p2 = pnand %p451_p1, %p448_p0 }
   0x9   :  { %456 = shalt.err (!%p453_p2)
}
   0xa   :  { %s457_s26 = scalar_lea.vmem %s23_s16, 512  ;;  %p462_p4 = scmp.lt.s32.totalorder %s23_s16, %s23_s16 }
   0xb   :  { %p458_p3 = scmp.ne.s32.totalorder %s23_s16, %s457_s26  ;;  %p463_p5 = scmp.lt.s32.totalorder %s457_s26, %s457_s26 }
   0xd   :  { %p464_p6 = por %p463_p5, %p462_p4 }
   0xf   :  { %p465_p7 = pnand %p464_p6, %p458_p3 }
  0x11   :  { %468 = shalt.err (!%p465_p7)
}
  0x12   :  { %25 = dma.hbm_to_vmem [thread:$0]  %s605_s2, 512, %s23_s16, [#allocation3]  }
  0x13   :  { %s469_s5 = scalar_lea.hbm %s606_s3, 2048 }
  0x14   :  { %p470_p8 = scmp.ne.s32.totalorder %s606_s3, %s469_s5  ;;  %p473_p9 = scmp.lt.u32.totalorder %s469_s5, %s606_s3 }
  0x16   :  { %p475_p10 = pnand %p473_p9, %p470_p8 }
  0x18   :  { %478 = shalt.err (!%p475_p10)
}
  0x19   :  { %s479_s10 = scalar_lea.vmem %s551_s18, 2048  ;;  %p484_p12 = scmp.lt.s32.totalorder %s551_s18, %s551_s18 }
  0x1a   :  { %p480_p11 = scmp.ne.s32.totalorder %s551_s18, %s479_s10  ;;  %p485_p13 = scmp.lt.s32.totalorder %s479_s10, %s479_s10 }
  0x1c   :  { %p486_p0 = por %p485_p13, %p484_p12 }
  0x1e   :  { %p487_p1 = pnand %p486_p0, %p480_p11 }
  0x20   :  { %490 = shalt.err (!%p487_p1)
}
  0x21   :  { %s521_s2 = smov 512   ;;  %s522_s11 = smov 32  }
  0x22   :  { %37 = dma.hbm_to_vmem [thread:$0]  %s606_s3, 2048, %s551_s18, [#allocation6], %s521_s2, %s521_s2, %s522_s11  }
  0x23   :  { %513 = dma.done.wait [#allocation3], 512  }
  0x24   :  { %514 = vsyncadd [#allocation3], 4294966784 }
  0x25   :  { %515 = dma.done.wait [#allocation6], 2048  }
  0x26   :  { %516 = vsyncadd [#allocation6], 4294965248  ;;  %v523_v0 = vmov 0   ;;  %v524_v1 = vmov 0.0   ;;  %v45_v2 = vld [vmem:[%s603_s0] sm:$0xff]  ;;  %v51_v3 = vld [vmem:[#allocation5 + $0x8] sm:$0xff]  ;;  %v66_v32 = vlaneseq }
  0x27   :  { %436 = vset.pattern.permute.xlu0 %v523_v0  ;;  %142 = vmatprep.mubr.f32.mxu0 %v524_v1  ;;  %v55_v4 = vld [vmem:[#allocation5 + $0x28] sm:$0xff]  ;;  %v50_v6 = vld [vmem:[#allocation5] sm:$0xff]  ;;  %v53_v8 = vld [vmem:[#allocation5 + $0x18] sm:$0xff]  ;;  %vm74_vm0 = vcmask 261120   ;;  %vm220_vm1 = vcmask 64512  }
  0x28   :  { %213 = vmatprep.mubr.f32.mxu1 %v524_v1  ;;  %69 = vperm.xlu0 %436, %v45_v2   ;;  %v409_v5 = vpack.c.bf16 %v55_v4, %v51_v3  ;;  %v54_v7 = vld [vmem:[#allocation5 + $0x20] sm:$0xff]  ;;  %v57_v10 = vld [vmem:[#allocation5 + $0x38] sm:$0xff]  ;;  %v52_v11 = vld [vmem:[#allocation5 + $0x10] sm:$0xff]  ;;  %v67_v33 = vand.u32 127, %v66_v32 }
  0x29   :  { %v411_v9 = vpack.c.bf16 %v54_v7, %v50_v6  ;;  %v56_v12 = vld [vmem:[#allocation5 + $0x30] sm:$0xff]  ;;  %v417_v13 = vpack.c.bf16 %v57_v10, %v53_v8  ;;  %v59_v15 = vld [vmem:[#allocation5 + $0x48] sm:$0xff]  ;;  %v58_v17 = vld [vmem:[#allocation5 + $0x40] sm:$0xff] }
  0x2a   :  { %410 = vmatprep.subr.bf16.mxu0 %v409_v5  ;;  %v419_v14 = vpack.c.bf16 %v56_v12, %v52_v11  ;;  %v63_v16 = vld [vmem:[#allocation5 + $0x68] sm:$0xff]  ;;  %v62_v19 = vld [vmem:[#allocation5 + $0x60] sm:$0xff]  ;;  %v61_v20 = vld [vmem:[#allocation5 + $0x58] sm:$0xff] }
  0x2b   :  { %412 = vmatpush1.bf16.msra.mxu0 %v411_v9  ;;  %v413_v18 = vpack.c.bf16 %v63_v16, %v59_v15  ;;  %v65_v21 = vld [vmem:[#allocation5 + $0x78] sm:$0xff]  ;;  %418 = vmatprep.subr.bf16.mxu1 %v417_v13  ;;  %v415_v22 = vpack.c.bf16 %v62_v19, %v58_v17  ;;  %v60_v24 = vld [vmem:[#allocation5 + $0x50] sm:$0xff]  ;;  %v47_v27 = vld [vmem:[#allocation2 + $0x8] sm:$0xff] }
  0x2c   :  { %v421_v23 = vpack.c.bf16 %v65_v21, %v61_v20  ;;  %v64_v25 = vld [vmem:[#allocation5 + $0x70] sm:$0xff]  ;;  %420 = vmatpush1.bf16.msra.mxu1 %v419_v14  ;;  %v49_v29 = vld [vmem:[#allocation2 + $0x18] sm:$0xff]  ;;  %v46_v30 = vld [vmem:[#allocation2] sm:$0xff] }
  0x2d   :  { %414 = vmatprep.subr.bf16.mxu0 %v413_v18  ;;  %v423_v26 = vpack.c.bf16 %v64_v25, %v60_v24  ;;  %v44_v28 = vld [vmem:[%s604_s1] sm:$0xff]  ;;  %s525_s1 = smov [#allocation7]  }
  0x2e   :  { %422 = vmatprep.subr.bf16.mxu1 %v421_v23  ;;  %v48_v31 = vld [vmem:[#allocation2 + $0x10] sm:$0xff]  ;;  %s392_s16 = sshll.u32 %s525_s1, 4  ;;  %s393_s16 = int_to_ptr.vmem [resolvable:$true] %s392_s16 }
  0x2f   :  { %416 = vmatpush1.bf16.msra.mxu0 %v415_v22  ;;  %s491_s17 = scalar_lea.vmem %s393_s16, 128  ;;  %p496_p3 = scmp.lt.s32.totalorder %s393_s16, %s393_s16 }
  0x30   :  { %224 = vmatprep.subr.mxu0 %v47_v27  ;;  %424 = vmatpush1.bf16.msra.mxu1 %v423_v26  ;;  %p492_p2 = scmp.ne.s32.totalorder %s393_s16, %s491_s17  ;;  %p497_p4 = scmp.lt.s32.totalorder %s491_s17, %s491_s17 }
  0x31   :  { %295 = vmatprep.subr.mxu1 %v49_v29 }
  0x32   :  { %403 = vmatmul.mubr.msk.f32.vlgmr.msra.gmra.mrb[0].mxu0 %vm74_vm0, %v44_v28  ;;  %p498_p5 = por %p497_p4, %p496_p3 }
  0x33   :  { %225 = vmatpush1.msra.mxu0 %v46_v30  ;;  %288 = vmatprep.mubr.f32.mxu0 %v524_v1 }
  0x34   :  { %404 = vmatmul.mubr.msk.f32.vlgmr.msra.gmra.mrb[0].mxu1 %vm74_vm0, %v44_v28  ;;  %p499_p6 = pnand %p498_p5, %p492_p2 }
  0x35   :  { %296 = vmatpush1.msra.mxu1 %v48_v31  ;;  %359 = vmatprep.mubr.f32.mxu1 %v524_v1 }
  0xa7   :  { %v70_v34 = vpop.permute.xlu0 %69 }
  0xa8   :  { %vm71_vm2 = vcmp.eq.s32.totalorder %v67_v33, %v70_v34 }
  0xa9   :  { %v402_v35 = vsel %vm71_vm2, 1.0, %v524_v1 }
  0xaa   :  { %405 = vmatmul.mubr.msk.f32.vlgmr.msra.gmra.mrb[0].mxu0 %vm220_vm1, %v402_v35  ;;  %406 = vmatmul.mubr.msk.f32.vlgmr.msra.gmra.mrb[0].mxu1 %vm220_vm1, %v402_v35 }
 0x17d   :  { %v290_v36 = vpop.f32.mrb[0].mxu0  ;;  %v361_v37 = vpop.f32.mrb[0].mxu1 }
 0x17e   :  { %v407_v38 = vmul.f32 -1.442695, %v290_v36  ;;  %v292_v39 = vpop.f32.mrb[1].mxu0  ;;  %v363_v40 = vpop.f32.mrb[1].mxu1 }
 0x17f   :  { %v408_v41 = vmul.f32 -1.442695, %v292_v39 }
 0x180   :  { %437 = vpow2.f32 %v407_v38 }
 0x181   :  { %439 = vpow2.f32 %v408_v41 }
 0x18a   :  { %v438_v42 = vpop.eup %437 }
 0x18b   :  { %v369_v43 = vadd.f32 1.0, %v438_v42  ;;  %v440_v44 = vpop.eup %439 }
 0x18c   :  { %v375_v45 = vadd.f32 1.0, %v440_v44 }
 0x18d   :  { %441 = vrcp.f32 %v369_v43 }
 0x18e   :  { %443 = vrcp.f32 %v375_v45 }
 0x197   :  { %v442_v46 = vpop.eup %441 }
 0x198   :  { %v378_v47 = vmul.f32 %v442_v46, %v363_v40  ;;  %v444_v49 = vpop.eup %443 }
 0x199   :  { %v381_v50 = vsub.f32 1.0, %v444_v49  ;;  %v383_v53 = vmul.f32 %v444_v49, %v44_v28 }
 0x19a   :  { %v379_v48 = vadd.f32 %v378_v47, %v361_v37 }
 0x19c   :  { %445 = vtanh.f32 %v379_v48 }
 0x1a6   :  { %v446_v51 = vpop.eup %445 }
 0x1a7   :  { %v382_v52 = vmul.f32 %v446_v51, %v381_v50 }
 0x1a9   :  { %v384_v54 = vadd.f32 %v383_v53, %v382_v52 }
 0x1ab   :  { %385 = vst.msk [vmem:[#allocation7] sm:$0xff] %vm74_vm0, %v384_v54 }
 0x1ac   :  { %502 = shalt.err (!%p499_p6)
}
 0x1ad   :  { %s503_s20 = scalar_lea.hbm %s607_s4, 128 }
 0x1ae   :  { %p504_p7 = scmp.ne.s32.totalorder %s607_s4, %s503_s20  ;;  %p507_p8 = scmp.lt.u32.totalorder %s503_s20, %s607_s4 }
 0x1b0   :  { %p509_p9 = pnand %p507_p8, %p504_p7 }
 0x1b2   :  { %512 = shalt.err (!%p509_p9)
}
 0x1b3   :  { %395 = dma.vmem_to_hbm [thread:$0]  %s393_s16, 128, %s607_s4, [#allocation4]  }
 0x1b4   :  { %517 = dma.done.wait [#allocation4], 128  }
 0x1b5   :  { %518 = vsyncadd [#allocation4], 4294967168 }
 0x1b6   :  { %399 = vsyncpa [#allocation3], 1 }
 0x1b7   :  { %400 = vsyncpa [#allocation6], 1 }
 0x1b8   :  { %401 = vsyncpa [#allocation4], 1 }

</bundles_post_ra>
